<compile_context>
chip_gen: v7x
topology: tpu7x:2x2x1
jax: 0.10.0
libtpu: 0.0.40
codegen_flags: <defaults>
</compile_context>

<pallas_src>
import functools

import jax
import jax.numpy as jnp
from jax.experimental import pallas as pl
from jax.experimental.pallas import tpu as pltpu

_LANES = 128
_SUBLANES = 8
_MAX_TILE_ROWS = 2048  # (2048, 128) f32 block = 1 MiB per input buffer


def _round_up(x, m):
    return ((x + m - 1) // m) * m


def _loss_kernel(a_ref, b_ref, o_ref, acc_ref, *, use_mse, n_energy, n_total,
                 w_energy, w_force, tile_rows, inner_blocks):
    """Weighted |a-b| (or (a-b)^2) partial reduction over one (tile_rows, 128) block."""
    core = pl.program_id(0)   # "parallel" axis (megacore split on v7x)
    step = pl.program_id(1)   # "arbitrary" reduction axis

    @pl.when(step == 0)
    def _():
        acc_ref[...] = jnp.zeros_like(acc_ref)

    d = a_ref[...].astype(jnp.float32) - b_ref[...].astype(jnp.float32)
    v = d * d if use_mse else jnp.abs(d)

    # Global flat element index of every element in this block.
    blk = core * inner_blocks + step
    row = jax.lax.broadcasted_iota(jnp.int32, (tile_rows, _LANES), 0)
    lane = jax.lax.broadcasted_iota(jnp.int32, (tile_rows, _LANES), 1)
    idx = blk * (tile_rows * _LANES) + row * _LANES + lane

    # Weight folds the 0.5, the 1/n means and alpha together; the outer where
    # also masks the zero-padded / out-of-bounds tail (select, so any garbage
    # read past the logical end never propagates).
    w = jnp.where(idx < n_energy, jnp.float32(w_energy), jnp.float32(w_force))
    contrib = jnp.where(idx < n_total, v * w, jnp.float32(0.0))

    # vreg-shaped partial sum: cheap VPU adds across the 8-row sub-blocks; the
    # expensive cross-lane reduce happens once, below.
    acc_ref[...] += contrib.reshape(
        tile_rows // _SUBLANES, _SUBLANES, _LANES).sum(axis=0)

    @pl.when(step == pl.num_programs(1) - 1)
    def _():
        o_ref[...] = jnp.sum(acc_ref[...]).reshape(1, 1)


def _build_slab(segments, padded_n):
    """Flatten + concat segments (native dtype), zero-pad to padded_n, reshape (rows, 128)."""
    flats = [jnp.ravel(s) for s in segments]
    n = sum(f.shape[0] for f in flats)
    dtype = jnp.result_type(*flats)
    pad = padded_n - n
    if pad:
        flats.append(jnp.zeros((pad,), dtype=dtype))
    flat = jnp.concatenate(flats) if len(flats) > 1 else flats[0]
    return flat.reshape(padded_n // _LANES, _LANES)


def _fused_weighted_loss(pred_segs, tgt_segs, n_energy, n_force,
                         w_energy, w_force, use_mse):
    n_total = n_energy + n_force
    rows_needed = pl.cdiv(n_total, _LANES)
    tile_rows = min(_MAX_TILE_ROWS, _round_up(rows_needed, _SUBLANES))
    total_blocks = pl.cdiv(rows_needed, tile_rows)
    # Leading "parallel" axis: lets v7x spread the reduction across its 2 TCs;
    # on 1-TC chips it is just an outer sequential loop.
    num_splits = 2 if total_blocks >= 2 else 1
    total_blocks = _round_up(total_blocks, num_splits)
    inner_blocks = total_blocks // num_splits
    padded_rows = total_blocks * tile_rows
    padded_n = padded_rows * _LANES

    a_slab = _build_slab(pred_segs, padded_n)
    b_slab = _build_slab(tgt_segs, padded_n)

    kernel = functools.partial(
        _loss_kernel, use_mse=use_mse, n_energy=n_energy, n_total=n_total,
        w_energy=w_energy, w_force=w_force, tile_rows=tile_rows,
        inner_blocks=inner_blocks)

    in_spec = pl.BlockSpec((tile_rows, _LANES),
                           lambda c, i: (c * inner_blocks + i, 0))

    partials = pl.pallas_call(
        kernel,
        out_shape=jax.ShapeDtypeStruct((num_splits, 1), jnp.float32),
        grid_spec=pltpu.PrefetchScalarGridSpec(
            num_scalar_prefetch=0,
            grid=(num_splits, inner_blocks),
            in_specs=[in_spec, in_spec],
            out_specs=pl.BlockSpec((1, 1), lambda c, i: (c, 0)),
            scratch_shapes=[pltpu.VMEM((_SUBLANES, _LANES), jnp.float32)],
        ),
        compiler_params=pltpu.CompilerParams(
            dimension_semantics=("parallel", "arbitrary")),
    )(a_slab, b_slab)
    return jnp.sum(partials)


def custom_loss(prediction, target, force_coefficient=0, loss="mae"):
    """JAX/Pallas equivalent of amptorch CustomLoss.forward."""
    if loss not in ("mae", "mse"):
        raise NotImplementedError(f"{loss} loss not available!")
    use_mse = loss == "mse"

    energy_pred, force_pred = prediction[0], prediction[1]
    energy_target = target[0]
    if energy_pred.shape != energy_target.shape:
        raise ValueError("energy prediction/target shape mismatch")

    n_energy = int(energy_pred.size)
    if n_energy == 0:
        # torch L1Loss/MSELoss mean-reduction over an empty tensor yields NaN.
        return jnp.float32(jnp.nan)

    alpha = force_coefficient
    if force_pred.size == 0:  # mirrors `force_pred.nelement() == 0`
        alpha = 0

    pred_segs, tgt_segs = [energy_pred], [energy_target]
    w_energy = 0.5 / n_energy
    n_force, w_force = 0, 0.0
    if alpha > 0:
        force_target = target[1]
        if force_pred.shape != force_target.shape:
            raise ValueError("force prediction/target shape mismatch")
        n_force = int(force_pred.size)
        w_force = 0.5 * float(alpha) / n_force
        pred_segs.append(force_pred)
        tgt_segs.append(force_target)

    return _fused_weighted_loss(pred_segs, tgt_segs, n_energy, n_force,
                                w_energy, w_force, use_mse)


if __name__ == "__main__":
    key = jax.random.PRNGKey(0)
    k1, k2, k3, k4 = jax.random.split(key, 4)

    # Small shapes implied by the forward: per-image energies + per-atom forces.
    batch = 8
    n_atoms = 24
    energy_pred = jax.random.normal(k1, (batch, 1), dtype=jnp.float32)
    energy_target = jax.random.normal(k2, (batch, 1), dtype=jnp.float32)
    force_pred = jax.random.normal(k3, (n_atoms, 3), dtype=jnp.float32)
    force_target = jax.random.normal(k4, (n_atoms, 3), dtype=jnp.float32)

    alpha = 0.04
    loss_val = custom_loss(
        (energy_pred, force_pred), (energy_target, force_target),
        force_coefficient=alpha, loss="mae")
    loss_val = jax.block_until_ready(loss_val)

    e_ref = jnp.mean(jnp.abs(energy_pred - energy_target))
    f_ref = jnp.mean(jnp.abs(force_pred - force_target))
    ref = 0.5 * (e_ref + alpha * f_ref)
    assert jnp.allclose(loss_val, ref, rtol=1e-5, atol=1e-6), (loss_val, ref)

    # 'mse' + empty-force path (alpha forced to 0).
    loss_no_force = custom_loss(
        (energy_pred, jnp.zeros((0, 3), jnp.float32)),
        (energy_target, jnp.zeros((0, 3), jnp.float32)),
        force_coefficient=alpha, loss="mse")
    loss_no_force = jax.block_until_ready(loss_no_force)
    ref2 = 0.5 * jnp.mean((energy_pred - energy_target) ** 2)
    assert jnp.allclose(loss_no_force, ref2, rtol=1e-5, atol=1e-6), (loss_no_force, ref2)

    # Larger case exercises multi-block tiling, tail masking and the 2-way
    # parallel (megacore) split path.
    kb1, kb2, kb3, kb4 = jax.random.split(jax.random.PRNGKey(1), 4)
    e_p = jax.random.normal(kb1, (300, 1), dtype=jnp.float32)
    e_t = jax.random.normal(kb2, (300, 1), dtype=jnp.float32)
    f_p = jax.random.normal(kb3, (100000, 3), dtype=jnp.float32)
    f_t = jax.random.normal(kb4, (100000, 3), dtype=jnp.float32)
    loss_big = jax.block_until_ready(
        custom_loss((e_p, f_p), (e_t, f_t), force_coefficient=alpha, loss="mae"))
    ref_big = 0.5 * (jnp.mean(jnp.abs(e_p - e_t))
                     + alpha * jnp.mean(jnp.abs(f_p - f_t)))
    assert jnp.allclose(loss_big, ref_big, rtol=1e-4, atol=1e-6), (loss_big, ref_big)

    print("KERNEL_OK")
</pallas_src>

<mosaic_0001>
module attributes {stable_mosaic.version = 11 : i64} {
  func.func @_loss_kernel(%arg0: i32, %arg1: i32, %arg2: memref<8x128xf32, #tpu.memory_space<vmem>>, %arg3: memref<8x128xf32, #tpu.memory_space<vmem>>, %arg4: memref<1x1xf32, #tpu.memory_space<vmem>>, %arg5: memref<8x128xf32, #tpu.memory_space<vmem>>) attributes {dimension_semantics = [#tpu.dimension_semantics<parallel>, #tpu.dimension_semantics<arbitrary>], iteration_bounds = array<i64: 1, 1>, scalar_prefetch = 0 : i64, scratch_operands = 1 : i64, tpu.core_type = #tpu.core_type<tc>, window_params = [{transform_indices = @transform_0, window_bounds = array<i64: 8, 128>}, {transform_indices = @transform_1, window_bounds = array<i64: 8, 128>}, {transform_indices = @transform_2, window_bounds = array<i64: 1, 1>}]} {
    %c0_i32 = arith.constant 0 : i32
    %0 = arith.cmpi eq, %arg1, %c0_i32 : i32
    %1 = arith.extui %0 : i1 to i32
    %c0_i32_0 = arith.constant 0 : i32
    %2 = arith.cmpi ne, %1, %c0_i32_0 : i32
    scf.if %2 {
      %cst_13 = arith.constant 0.000000e+00 : f32
      %35 = vector.broadcast %cst_13 : f32 to vector<8x128xf32>
      %c0_14 = arith.constant 0 : index
      %c0_15 = arith.constant 0 : index
      %36 = vector.load %arg5[%c0_14, %c0_15] : memref<8x128xf32, #tpu.memory_space<vmem>>, vector<8x128xf32>
      tpu.vector_store %arg5[%c0_14, %c0_15], %35 {strides = array<i32>} : memref<8x128xf32, #tpu.memory_space<vmem>>, vector<8x128xf32>,
    } else {
    }
    %c0 = arith.constant 0 : index
    %c0_1 = arith.constant 0 : index
    %3 = vector.load %arg2[%c0, %c0_1] : memref<8x128xf32, #tpu.memory_space<vmem>>, vector<8x128xf32>
    %c0_2 = arith.constant 0 : index
    %c0_3 = arith.constant 0 : index
    %4 = vector.load %arg3[%c0_2, %c0_3] : memref<8x128xf32, #tpu.memory_space<vmem>>, vector<8x128xf32>
    %5 = arith.subf %3, %4 : vector<8x128xf32>
    %6 = math.absf %5 : vector<8x128xf32>
    %c1_i32 = arith.constant 1 : i32
    %7 = arith.muli %arg0, %c1_i32 : i32
    %8 = arith.addi %7, %arg1 : i32
    %9 = tpu.iota {dimensions = array<i32: 0>} : vector<8x128xi32>
    %10 = tpu.iota {dimensions = array<i32: 1>} : vector<8x128xi32>
    %c1024_i32 = arith.constant 1024 : i32
    %11 = arith.muli %8, %c1024_i32 : i32
    %c128_i32 = arith.constant 128 : i32
    %12 = vector.broadcast %c128_i32 : i32 to vector<8x128xi32>
    %13 = arith.muli %9, %12 : vector<8x128xi32>
    %14 = vector.broadcast %11 : i32 to vector<8x128xi32>
    %15 = arith.addi %14, %13 : vector<8x128xi32>
    %16 = arith.addi %15, %10 : vector<8x128xi32>
    %c8_i32 = arith.constant 8 : i32
    %17 = vector.broadcast %c8_i32 : i32 to vector<8x128xi32>
    %18 = arith.cmpi slt, %16, %17 : vector<8x128xi32>
    %cst = arith.constant 6.250000e-02 : f32
    %cst_4 = arith.constant 2.77777785E-4 : f32
    %19 = vector.broadcast %cst : f32 to vector<8x128xf32>
    %20 = vector.broadcast %cst_4 : f32 to vector<8x128xf32>
    %21 = arith.select %18, %19, %20 : vector<8x128xi1>, vector<8x128xf32>
    %c80_i32 = arith.constant 80 : i32
    %22 = vector.broadcast %c80_i32 : i32 to vector<8x128xi32>
    %23 = arith.cmpi slt, %16, %22 : vector<8x128xi32>
    %24 = arith.mulf %6, %21 : vector<8x128xf32>
    %cst_5 = arith.constant 0.000000e+00 : f32
    %25 = vector.broadcast %cst_5 : f32 to vector<8x128xf32>
    %26 = arith.select %23, %24, %25 : vector<8x128xi1>, vector<8x128xf32>
    %c0_6 = arith.constant 0 : index
    %c0_7 = arith.constant 0 : index
    %27 = vector.load %arg5[%c0_6, %c0_7] : memref<8x128xf32, #tpu.memory_space<vmem>>, vector<8x128xf32>
    %28 = vector.shape_cast %26 : vector<8x128xf32> to vector<1x8x128xf32>
    %cst_8 = arith.constant dense<0.000000e+00> : vector<8x128xf32>
    %29 = vector.multi_reduction <add>, %28, %cst_8 [0] : vector<1x8x128xf32> to vector<8x128xf32>
    %30 = arith.addf %27, %29 : vector<8x128xf32>
    %c0_9 = arith.constant 0 : index
    %c0_10 = arith.constant 0 : index
    %31 = vector.load %arg5[%c0_9, %c0_10] : memref<8x128xf32, #tpu.memory_space<vmem>>, vector<8x128xf32>
    tpu.vector_store %arg5[%c0_9, %c0_10], %30 {strides = array<i32>} : memref<8x128xf32, #tpu.memory_space<vmem>>, vector<8x128xf32>,
    %c0_i32_11 = arith.constant 0 : i32
    %32 = arith.cmpi eq, %arg1, %c0_i32_11 : i32
    %33 = arith.extui %32 : i1 to i32
    %c0_i32_12 = arith.constant 0 : i32
    %34 = arith.cmpi ne, %33, %c0_i32_12 : i32
    scf.if %34 {
      %c0_13 = arith.constant 0 : index
      %c0_14 = arith.constant 0 : index
      %35 = vector.load %arg5[%c0_13, %c0_14] : memref<8x128xf32, #tpu.memory_space<vmem>>, vector<8x128xf32>
      %36 = vector.shape_cast %35 : vector<8x128xf32> to vector<1x8x128xf32>
      %cst_15 = arith.constant dense<0.000000e+00> : vector<1xf32>
      %37 = vector.multi_reduction <add>, %36, %cst_15 [1, 2] : vector<1x8x128xf32> to vector<1xf32>
      %38 = vector.shape_cast %37 : vector<1xf32> to vector<1x1x1xf32>
      %39 = vector.extract %38[0, 0, 0] : f32 from vector<1x1x1xf32>
      %40 = vector.broadcast %39 : f32 to vector<1x1xf32>
      %c0_16 = arith.constant 0 : index
      %c0_17 = arith.constant 0 : index
      %41 = vector.load %arg4[%c0_16, %c0_17] : memref<1x1xf32, #tpu.memory_space<vmem>>, vector<1x1xf32>
      tpu.vector_store %arg4[%c0_16, %c0_17], %40 {strides = array<i32>} : memref<1x1xf32, #tpu.memory_space<vmem>>, vector<1x1xf32>,
    } else {
    }
    return
  }
  func.func @transform_0(%arg0: i32, %arg1: i32) -> (i32, i32) {
    %c1_i32 = arith.constant 1 : i32
    %0 = arith.muli %arg0, %c1_i32 : i32
    %1 = arith.addi %0, %arg1 : i32
    %c0_i32 = arith.constant 0 : i32
    %c0_i32_0 = arith.constant 0 : i32
    return %1, %c0_i32 : i32, i32
  }
  func.func @transform_1(%arg0: i32, %arg1: i32) -> (i32, i32) {
    %c1_i32 = arith.constant 1 : i32
    %0 = arith.muli %arg0, %c1_i32 : i32
    %1 = arith.addi %0, %arg1 : i32
    %c0_i32 = arith.constant 0 : i32
    %c0_i32_0 = arith.constant 0 : i32
    return %1, %c0_i32 : i32, i32
  }
  func.func @transform_2(%arg0: i32, %arg1: i32) -> (i32, i32) {
    %c0_i32 = arith.constant 0 : i32
    %c0_i32_0 = arith.constant 0 : i32
    return %arg0, %c0_i32 : i32, i32
  }
}

</mosaic_0001>

<bundles_post_ra>
// kernel: tpu_custom_call.1
= control target key start
LH: loop header
LB: loop body
LE: loop exit
PB: predicated region body
PF: predicated region fallthrough
CT: control target
= control target key end

     0   :  { %7 = vsyncpa [#allocation4], 0  ;;  %s237_s0 = inlined_call_operand.hbm [shape: f32[8,128], index: 0, kind: input, shape index: {}]   ;;  %s238_s1 = inlined_call_operand.hbm [shape: f32[8,128], index: 1, kind: input, shape index: {}]   ;;  %s239_s2 = inlined_call_operand.hbm [shape: f32[1,1], index: 2, kind: output, shape index: {}]  }
   0x1   :  { %8 = vsyncpa [#allocation7], 0 }
   0x2   :  { %9 = vsyncpa [#allocation5], 0  ;;  %s182_s9 = smov [#allocation3]   ;;  %s183_s11 = smov [#allocation6]  }
   0x3   :  { %s19_s10 = sshll.u32 %s182_s9, 4  ;;  %s32_s12 = sshll.u32 %s183_s11, 4  ;;  %s20_s10 = int_to_ptr.vmem [resolvable:$true] %s19_s10  ;;  %s33_s12 = int_to_ptr.vmem [resolvable:$true] %s32_s12 }
   0x4   :  { %s110_s15 = scalar_lea.hbm %s237_s0, 128 }
   0x5   :  { %p111_p0 = scmp.ne.s32.totalorder %s237_s0, %s110_s15  ;;  %p114_p1 = scmp.lt.u32.totalorder %s110_s15, %s237_s0 }
   0x7   :  { %p116_p2 = pnand %p114_p1, %p111_p0 }
   0x9   :  { %119 = shalt.err (!%p116_p2)
}
   0xa   :  { %s120_s20 = scalar_lea.vmem %s20_s10, 128  ;;  %p125_p4 = scmp.lt.s32.totalorder %s20_s10, %s20_s10 }
   0xb   :  { %p121_p3 = scmp.ne.s32.totalorder %s20_s10, %s120_s20  ;;  %p126_p5 = scmp.lt.s32.totalorder %s120_s20, %s120_s20 }
   0xd   :  { %p127_p6 = por %p126_p5, %p125_p4 }
   0xf   :  { %p128_p7 = pnand %p127_p6, %p121_p3 }
  0x11   :  { %131 = shalt.err (!%p128_p7)
}
  0x12   :  { %22 = dma.hbm_to_vmem [thread:$0]  %s237_s0, 128, %s20_s10, [#allocation4]  }
  0x13   :  { %s132_s25 = scalar_lea.hbm %s238_s1, 128 }
  0x14   :  { %p133_p8 = scmp.ne.s32.totalorder %s238_s1, %s132_s25  ;;  %p136_p9 = scmp.lt.u32.totalorder %s132_s25, %s238_s1 }
  0x16   :  { %p138_p10 = pnand %p136_p9, %p133_p8 }
  0x18   :  { %141 = shalt.err (!%p138_p10)
}
  0x19   :  { %s142_s30 = scalar_lea.vmem %s33_s12, 128  ;;  %p147_p12 = scmp.lt.s32.totalorder %s33_s12, %s33_s12 }
  0x1a   :  { %p143_p11 = scmp.ne.s32.totalorder %s33_s12, %s142_s30  ;;  %p148_p13 = scmp.lt.s32.totalorder %s142_s30, %s142_s30 }
  0x1c   :  { %p149_p0 = por %p148_p13, %p147_p12 }
  0x1e   :  { %p150_p1 = pnand %p149_p0, %p143_p11 }
  0x20   :  { %153 = shalt.err (!%p150_p1)
}
  0x21   :  { %35 = dma.hbm_to_vmem [thread:$0]  %s238_s1, 128, %s33_s12, [#allocation7]  }
  0x22   :  { %176 = dma.done.wait [#allocation4], 128  }
  0x23   :  { %177 = vsyncadd [#allocation4], 4294967168 }
  0x24   :  { %178 = dma.done.wait [#allocation7], 128  }
  0x25   :  { %179 = vsyncadd [#allocation7], 4294967168  ;;  %v54_v0 = vlaneseq  ;;  %v49_v5 = vld [vmem:[#allocation3] sm:$0xff]  ;;  %v50_v6 = vld [vmem:[#allocation6] sm:$0xff]  ;;  %v184_v8 = vmov 0.00027777778  }
  0x26   :  { %v51_v7 = vsub.f32 %v49_v5, %v50_v6  ;;  %s185_s1 = smov [#allocation8]   ;;  %vm86_vm2 = vcmask 0  }
  0x27   :  { %v55_v1 = vshrl.u32 %v54_v0, 7  ;;  %v57_v2 = vand.u32 127, %v54_v0  ;;  %s94_s4 = sshll.u32 %s185_s1, 4  ;;  %s95_s4 = int_to_ptr.vmem [resolvable:$true] %s94_s4 }
  0x28   :  { %v52_v10 = vand.u32 2147483647, %v51_v7  ;;  %s154_s6 = scalar_lea.vmem %s95_s4, 16  ;;  %s158_s7 = scalar_lea.vmem %s95_s4, 32 }
  0x29   :  { %v59_v3 = vmul.u32 128, %v55_v1  ;;  %p155_p2 = scmp.ne.s32.totalorder %s95_s4, %s154_s6  ;;  %p159_p3 = scmp.lt.s32.totalorder %s95_s4, %s95_s4 }
  0x2a   :  { %p160_p4 = scmp.lt.s32.totalorder %s158_s7, %s154_s6 }
  0x2b   :  { %v62_v4 = vadd.s32 %v59_v3, %v57_v2 }
  0x2c   :  { %p161_p5 = por %p160_p4, %p159_p3 }
  0x2d   :  { %vm63_vm0 = vcmp.lt.s32.totalorder %v62_v4, 8  ;;  %vm65_vm1 = vcmp.lt.s32.totalorder %v62_v4, 80 }
  0x2e   :  { %v64_v9 = vsel %vm63_vm0, 0.0625, %v184_v8  ;;  %p162_p6 = pnand %p161_p5, %p155_p2 }
  0x2f   :  { %v66_v11 = vmul.f32 %v64_v9, %v52_v10 }
  0x31   :  { %v67_v12 = vsel %vm65_vm1, %v66_v11, 0.0 }
  0x32   :  { %76 = vadd.xlane.f32.xlu0 %v67_v12 }
  0xbf   :  { %v77_v13 = vpop.xlane.xlu0 %76 }
  0xc0   :  { %v78_v14 = vrot.slane %v77_v13, 4 }
  0xc2   :  { %v79_v15 = vadd.f32 %v78_v14, %v77_v13 }
  0xc4   :  { %v80_v16 = vrot.slane %v79_v15, 2 }
  0xc6   :  { %v81_v17 = vadd.f32 %v80_v16, %v79_v15 }
  0xc8   :  { %v82_v18 = vrot.slane %v81_v17, 1 }
  0xca   :  { %v83_v19 = vadd.f32 %v82_v18, %v81_v17 }
  0xcc   :  { %104 = vpush %v83_v19 }
  0xfd   :  { %s105_s5 = spop %104 }
  0xfe   :  { %v85_v20 = vstv %s105_s5 }
  0xff   :  { %87 = vst.msk [vmem:[#allocation8] sm:$0x1] %vm86_vm2, %v85_v20 }
 0x100   :  { %165 = shalt.err (!%p162_p6)
}
 0x101   :  { %s166_s10 = scalar_lea.hbm %s239_s2, 16 }
 0x102   :  { %p167_p7 = scmp.ne.s32.totalorder %s239_s2, %s166_s10  ;;  %p170_p8 = scmp.lt.u32.totalorder %s166_s10, %s239_s2 }
 0x104   :  { %p172_p9 = pnand %p170_p8, %p167_p7 }
 0x106   :  { %175 = shalt.err (!%p172_p9)
}
 0x107   :  { %97 = dma.vmem_to_hbm [thread:$0]  %s95_s4, 16, %s239_s2, [#allocation5]  }
 0x108   :  { %180 = dma.done.wait [#allocation5], 16  }
 0x109   :  { %181 = vsyncadd [#allocation5], 4294967280 }
 0x10a   :  { %101 = vsyncpa [#allocation4], 1 }
 0x10b   :  { %102 = vsyncpa [#allocation7], 1 }
 0x10c   :  { %103 = vsyncpa [#allocation5], 1 }

</bundles_post_ra>
